<compile_context>
chip_gen: v6e
topology: v6e:2x2x1
jax: 0.10.0
libtpu: 0.0.40
codegen_flags: <defaults>
</compile_context>

<pallas_src>
import functools

import jax
import jax.numpy as jnp
from jax.experimental import pallas as pl
from jax.experimental.pallas import tpu as pltpu


def _round_up(x, m):
    return (x + m - 1) // m * m


# ----------------------------------------------------------------------------
# Fused kernel: one batch element per grid step; everything stays in VMEM.
# ----------------------------------------------------------------------------
def _fused_mhsa_kernel(x_ref, wq_ref, wk_ref, wv_ref, wo_ref, bo_ref, o_ref, *,
                       heads, scale):
    x = x_ref[...]                                   # (N, dim), compute dtype
    cd = x.dtype                                     # MXU operand dtype
    n, dim = x.shape

    # Head-batched q/k/v projections: (H, N, dim) x (H, dim, d) -> (H, N, d).
    # Broadcasting x over the head axis keeps every matmul in the standard
    # batched form (single batch dim, single contracting dim), so there is no
    # lane-axis slicing, no per-head relayout and no per-head Python loop.
    # Broadcast is hoisted once (JAX does not CSE broadcast_in_dim).
    xb = jnp.broadcast_to(x, (heads, n, dim))

    q = jnp.einsum('hnk,hkd->hnd', xb, wq_ref[...],
                   preferred_element_type=jnp.float32)          # (H, N, d) f32
    k = jnp.einsum('hnk,hkd->hnd', xb, wk_ref[...],
                   preferred_element_type=cd)                   # (H, N, d) cd
    v = jnp.einsum('hnk,hkd->hnd', xb, wv_ref[...],
                   preferred_element_type=cd)                   # (H, N, d) cd

    # Fold the softmax scale into q once (f32), then cast once for the MXU.
    q = (q * scale).astype(cd)

    # Batched scores + f32 softmax; reciprocal goes to the EUP slot.
    s = jnp.einsum('hqd,hkd->hqk', q, k,
                   preferred_element_type=jnp.float32)          # (H, N, N) f32
    m = jnp.max(s, axis=-1, keepdims=True)
    p = jnp.exp(s - m)
    p = p * pl.reciprocal(jnp.sum(p, axis=-1, keepdims=True), approx=True)

    # Batched attention-weighted values.
    o = jnp.einsum('hqk,hkd->hqd', p.astype(cd), v,
                   preferred_element_type=jnp.float32)          # (H, N, d) f32

    # to_out contracted per head and reduced over heads (no lane-axis concat):
    #   y = sum_h o_h @ W_out_h + b
    y = jnp.einsum('hnd,hdm->hnm', o.astype(cd), wo_ref[...],
                   preferred_element_type=jnp.float32)          # (H, N, dim_p)
    y = jnp.sum(y, axis=0) + bo_ref[...]                        # (N, dim_p) f32
    o_ref[...] = y.astype(o_ref.dtype)


# ----------------------------------------------------------------------------
# Wrapper.
# ----------------------------------------------------------------------------
def _pick_vmem_limit_bytes():
    """Generation-aware VMEM budget: ~3/4 of physical VMEM (v5e/v6e: 128 MiB,
    v7x: 64 MiB); falls back to 64 MiB if the query is unavailable."""
    try:
        phys = getattr(pltpu.get_tpu_info(), "vmem_capacity_bytes", None)
    except Exception:
        phys = None
    if not phys:
        return 64 * 1024 * 1024
    return int(phys) * 3 // 4


def _resident_spec(block_shape):
    """Spec for weights/bias: constant index map (resident across the grid);
    request single buffering so the default double-buffering does not
    duplicate them in VMEM.  Falls back gracefully on older Pallas versions."""
    index_map = lambda b: (0,) * len(block_shape)
    try:
        return pl.BlockSpec(block_shape, index_map, pipeline_mode=pl.Buffered(1))
    except (TypeError, AttributeError):
        return pl.BlockSpec(block_shape, index_map)


def attention_forward(x, params, *, heads, dim_head,
                      compute_dtype=jnp.bfloat16):
    """Fused ViT-style MHSA forward.  x: (B, N, dim) -> (B, N, dim).

    qkv projection, per-head softmax attention and the output projection run
    inside one pallas_call over grid=(B,) (dimension_semantics=("parallel",)),
    so all intermediates stay in VMEM: one launch, no HBM round trips, and
    B >= 2 lets v7x shard batch elements across its two TensorCores.
    """
    B, N, dim = x.shape
    inner = heads * dim_head
    scale = dim_head ** (-0.5)
    out_dtype = x.dtype
    cd = compute_dtype if compute_dtype is not None else x.dtype

    # --- wrapper-side weight re-layout (weights only; tiny, done by XLA) ----
    # w_qkv (dim, 3*inner) -> per-head projection tensors (H, dim, d) so the
    # kernel issues head-batched matmuls with no lane-axis slicing.
    w_qkv = params["w_qkv"].reshape(dim, 3, heads, dim_head)
    w_q = jnp.transpose(w_qkv[:, 0], (1, 0, 2)).astype(cd)      # (H, dim, d)
    w_k = jnp.transpose(w_qkv[:, 1], (1, 0, 2)).astype(cd)      # (H, dim, d)
    w_v = jnp.transpose(w_qkv[:, 2], (1, 0, 2)).astype(cd)      # (H, dim, d)

    # w_out (inner, dim) -> (H, d, dim); bias (dim,) -> (1, dim).  Pad the
    # output feature dim to a multiple of 128 so the final store is
    # lane-dense (unmasked vst); padding columns are zero and sliced off.
    dim_p = _round_up(dim, 128)
    w_out = params["w_out"].reshape(heads, dim_head, dim)
    b_out = params["b_out"].reshape(1, dim).astype(jnp.float32)
    if dim_p != dim:
        w_out = jnp.pad(w_out, ((0, 0), (0, 0), (0, dim_p - dim)))
        b_out = jnp.pad(b_out, ((0, 0), (0, dim_p - dim)))
    w_out = w_out.astype(cd)

    x_c = x.astype(cd)

    kernel = functools.partial(_fused_mhsa_kernel, heads=heads, scale=scale)

    out = pl.pallas_call(
        kernel,
        out_shape=jax.ShapeDtypeStruct((B, N, dim_p), out_dtype),
        grid=(B,),
        in_specs=[
            pl.BlockSpec((None, N, dim), lambda b: (b, 0, 0)),   # x[b]
            _resident_spec((heads, dim, dim_head)),              # w_q
            _resident_spec((heads, dim, dim_head)),              # w_k
            _resident_spec((heads, dim, dim_head)),              # w_v
            _resident_spec((heads, dim_head, dim_p)),            # w_out
            _resident_spec((1, dim_p)),                          # b_out
        ],
        out_specs=pl.BlockSpec((None, N, dim_p), lambda b: (b, 0, 0)),
        compiler_params=pltpu.CompilerParams(
            dimension_semantics=("parallel",),
            vmem_limit_bytes=_pick_vmem_limit_bytes(),
        ),
    )(x_c, w_q, w_k, w_v, w_out, b_out)

    return out[..., :dim] if dim_p != dim else out


# ----------------------------------------------------------------------------
# Pure-JAX reference for validation (mirrors the PyTorch module, dropout=0).
# ----------------------------------------------------------------------------
def attention_reference(x, params, *, heads, dim_head):
    B, N, dim = x.shape
    inner = heads * dim_head
    scale = dim_head ** (-0.5)
    qkv = x @ params["w_qkv"]
    qkv = qkv.reshape(B, N, 3, heads, dim_head)
    q = jnp.transpose(qkv[:, :, 0], (0, 2, 1, 3))
    k = jnp.transpose(qkv[:, :, 1], (0, 2, 1, 3))
    v = jnp.transpose(qkv[:, :, 2], (0, 2, 1, 3))
    dots = jnp.einsum("bhid,bhjd->bhij", q, k) * scale
    attn = jax.nn.softmax(dots, axis=-1)
    out = jnp.einsum("bhij,bhjd->bhid", attn, v)
    out = jnp.transpose(out, (0, 2, 1, 3)).reshape(B, N, inner)
    return out @ params["w_out"] + params["b_out"]


if __name__ == "__main__":
    # Small shapes consistent with the module: dim=32, heads=4, dim_head=16.
    B, N, dim = 2, 8, 32
    heads, dim_head = 4, 16
    inner = heads * dim_head

    key = jax.random.PRNGKey(0)
    kx, kq, kw, kb = jax.random.split(key, 4)

    x = jax.random.normal(kx, (B, N, dim), dtype=jnp.float32)

    # Deterministic synthetic parameters (no checkpoint load).
    params = {
        "w_qkv": jax.random.normal(kq, (dim, 3 * inner), dtype=jnp.float32) * 0.05,
        "w_out": jax.random.normal(kw, (inner, dim), dtype=jnp.float32) * 0.05,
        "b_out": jax.random.normal(kb, (dim,), dtype=jnp.float32) * 0.05,
    }

    y_ref = attention_reference(x, params, heads=heads, dim_head=dim_head)

    # f32 operand path (tight tolerance; approx EUP reciprocal is the only
    # deliberate deviation from exact softmax).
    y_f32 = attention_forward(x, params, heads=heads, dim_head=dim_head,
                              compute_dtype=jnp.float32)
    y_f32 = jax.block_until_ready(y_f32)
    assert y_f32.shape == (B, N, dim)
    assert jnp.allclose(y_f32, y_ref, atol=2e-3, rtol=2e-3), "f32 mismatch"

    # Default path: bf16 MXU operands, f32 softmax / accumulation.
    y_bf16 = attention_forward(x, params, heads=heads, dim_head=dim_head)
    y_bf16 = jax.block_until_ready(y_bf16)
    assert y_bf16.shape == (B, N, dim)
    assert jnp.allclose(y_bf16.astype(jnp.float32), y_ref,
                        atol=5e-2, rtol=5e-2), "bf16 mismatch"

    print("KERNEL_OK")
</pallas_src>

<mosaic_0001>
module attributes {stable_mosaic.version = 11 : i64} {
  func.func @_fused_mhsa_kernel(%arg0: i32, %arg1: memref<1x8x32xf32, #tpu.memory_space<vmem>>, %arg2: memref<4x32x16xf32, #tpu.memory_space<vmem>>, %arg3: memref<4x32x16xf32, #tpu.memory_space<vmem>>, %arg4: memref<4x32x16xf32, #tpu.memory_space<vmem>>, %arg5: memref<4x16x128xf32, #tpu.memory_space<vmem>>, %arg6: memref<1x128xf32, #tpu.memory_space<vmem>>, %arg7: memref<1x8x128xf32, #tpu.memory_space<vmem>>) attributes {dimension_semantics = [#tpu.dimension_semantics<parallel>], iteration_bounds = array<i64: 2>, scalar_prefetch = 0 : i64, scratch_operands = 0 : i64, tpu.core_type = #tpu.core_type<tc>, window_params = [{transform_indices = @transform_0, window_bounds = array<i64: 1, 8, 32>}, {pipeline_mode = #tpu.pipeline_mode<synchronous>, transform_indices = @transform_1, window_bounds = array<i64: 4, 32, 16>}, {pipeline_mode = #tpu.pipeline_mode<synchronous>, transform_indices = @transform_2, window_bounds = array<i64: 4, 32, 16>}, {pipeline_mode = #tpu.pipeline_mode<synchronous>, transform_indices = @transform_3, window_bounds = array<i64: 4, 32, 16>}, {pipeline_mode = #tpu.pipeline_mode<synchronous>, transform_indices = @transform_4, window_bounds = array<i64: 4, 16, 128>}, {pipeline_mode = #tpu.pipeline_mode<synchronous>, transform_indices = @transform_5, window_bounds = array<i64: 1, 128>}, {transform_indices = @transform_6, window_bounds = array<i64: 1, 8, 128>}]} {
    %c0 = arith.constant 0 : index
    %c0_0 = arith.constant 0 : index
    %c0_1 = arith.constant 0 : index
    %0 = vector.load %arg1[%c0, %c0_0, %c0_1] : memref<1x8x32xf32, #tpu.memory_space<vmem>>, vector<1x8x32xf32>
    %1 = vector.shape_cast %0 : vector<1x8x32xf32> to vector<8x32xf32>
    %2 = vector.shape_cast %1 : vector<8x32xf32> to vector<1x8x32xf32>
    %3 = vector.broadcast %2 : vector<1x8x32xf32> to vector<4x8x32xf32>
    %c0_2 = arith.constant 0 : index
    %c0_3 = arith.constant 0 : index
    %c0_4 = arith.constant 0 : index
    %4 = vector.load %arg2[%c0_2, %c0_3, %c0_4] : memref<4x32x16xf32, #tpu.memory_space<vmem>>, vector<4x32x16xf32>
    "tpu.trace_start"() <{level = 10 : i32, message = "hnk,hkd->hnd"}> : () -> ()
    %cst = arith.constant dense<0.000000e+00> : vector<4x8x16xf32>
    %5 = tpu.matmul %3, %4, %cst {dimension_numbers = #tpu.dot_dimension_numbers<[2], [1], [1], [2], [0, 0, 0, 1, 1, 2], [0], [0]>} : vector<4x8x32xf32>, vector<4x32x16xf32>, vector<4x8x16xf32> -> vector<4x8x16xf32>
    "tpu.trace_stop"() : () -> ()
    %c0_5 = arith.constant 0 : index
    %c0_6 = arith.constant 0 : index
    %c0_7 = arith.constant 0 : index
    %6 = vector.load %arg3[%c0_5, %c0_6, %c0_7] : memref<4x32x16xf32, #tpu.memory_space<vmem>>, vector<4x32x16xf32>
    "tpu.trace_start"() <{level = 10 : i32, message = "hnk,hkd->hnd"}> : () -> ()
    %cst_8 = arith.constant dense<0.000000e+00> : vector<4x8x16xf32>
    %7 = tpu.matmul %3, %6, %cst_8 {dimension_numbers = #tpu.dot_dimension_numbers<[2], [1], [1], [2], [0, 0, 0, 1, 1, 2], [0], [0]>} : vector<4x8x32xf32>, vector<4x32x16xf32>, vector<4x8x16xf32> -> vector<4x8x16xf32>
    "tpu.trace_stop"() : () -> ()
    %c0_9 = arith.constant 0 : index
    %c0_10 = arith.constant 0 : index
    %c0_11 = arith.constant 0 : index
    %8 = vector.load %arg4[%c0_9, %c0_10, %c0_11] : memref<4x32x16xf32, #tpu.memory_space<vmem>>, vector<4x32x16xf32>
    "tpu.trace_start"() <{level = 10 : i32, message = "hnk,hkd->hnd"}> : () -> ()
    %cst_12 = arith.constant dense<0.000000e+00> : vector<4x8x16xf32>
    %9 = tpu.matmul %3, %8, %cst_12 {dimension_numbers = #tpu.dot_dimension_numbers<[2], [1], [1], [2], [0, 0, 0, 1, 1, 2], [0], [0]>} : vector<4x8x32xf32>, vector<4x32x16xf32>, vector<4x8x16xf32> -> vector<4x8x16xf32>
    "tpu.trace_stop"() : () -> ()
    %cst_13 = arith.constant 2.500000e-01 : f32
    %10 = vector.broadcast %cst_13 : f32 to vector<4x8x16xf32>
    %11 = arith.mulf %5, %10 : vector<4x8x16xf32>
    "tpu.trace_start"() <{level = 10 : i32, message = "hqd,hkd->hqk"}> : () -> ()
    %cst_14 = arith.constant dense<0.000000e+00> : vector<4x8x8xf32>
    %12 = tpu.matmul %11, %7, %cst_14 {dimension_numbers = #tpu.dot_dimension_numbers<[2], [2], [1], [1], [0, 0, 0, 1, 1, 1], [0], [0]>} : vector<4x8x16xf32>, vector<4x8x16xf32>, vector<4x8x8xf32> -> vector<4x8x8xf32>
    "tpu.trace_stop"() : () -> ()
    %cst_15 = arith.constant dense<0xFF800000> : vector<4x8xf32>
    %13 = vector.multi_reduction <maximumf>, %12, %cst_15 [2] : vector<4x8x8xf32> to vector<4x8xf32>
    %14 = vector.shape_cast %13 : vector<4x8xf32> to vector<4x8x1xf32>
    %15 = vector.broadcast %14 : vector<4x8x1xf32> to vector<4x8x8xf32>
    %16 = arith.subf %12, %15 : vector<4x8x8xf32>
    %17 = math.exp %16 : vector<4x8x8xf32>
    %cst_16 = arith.constant dense<0.000000e+00> : vector<4x8xf32>
    %18 = vector.multi_reduction <add>, %17, %cst_16 [2] : vector<4x8x8xf32> to vector<4x8xf32>
    %19 = vector.shape_cast %18 : vector<4x8xf32> to vector<4x8x1xf32>
    %20 = tpu.reciprocal %19 {approx = true} : vector<4x8x1xf32> -> vector<4x8x1xf32>
    %21 = vector.broadcast %20 : vector<4x8x1xf32> to vector<4x8x8xf32>
    %22 = arith.mulf %17, %21 : vector<4x8x8xf32>
    "tpu.trace_start"() <{level = 10 : i32, message = "hqk,hkd->hqd"}> : () -> ()
    %cst_17 = arith.constant dense<0.000000e+00> : vector<4x8x16xf32>
    %23 = tpu.matmul %22, %9, %cst_17 {dimension_numbers = #tpu.dot_dimension_numbers<[2], [1], [1], [2], [0, 0, 0, 1, 1, 2], [0], [0]>} : vector<4x8x8xf32>, vector<4x8x16xf32>, vector<4x8x16xf32> -> vector<4x8x16xf32>
    "tpu.trace_stop"() : () -> ()
    %c0_18 = arith.constant 0 : index
    %c0_19 = arith.constant 0 : index
    %c0_20 = arith.constant 0 : index
    %24 = vector.load %arg5[%c0_18, %c0_19, %c0_20] : memref<4x16x128xf32, #tpu.memory_space<vmem>>, vector<4x16x128xf32>
    "tpu.trace_start"() <{level = 10 : i32, message = "hnd,hdm->hnm"}> : () -> ()
    %cst_21 = arith.constant dense<0.000000e+00> : vector<4x8x128xf32>
    %25 = tpu.matmul %23, %24, %cst_21 {dimension_numbers = #tpu.dot_dimension_numbers<[2], [1], [1], [2], [0, 0, 0, 1, 1, 2], [0], [0]>} : vector<4x8x16xf32>, vector<4x16x128xf32>, vector<4x8x128xf32> -> vector<4x8x128xf32>
    "tpu.trace_stop"() : () -> ()
    %cst_22 = arith.constant dense<0.000000e+00> : vector<8x128xf32>
    %26 = vector.multi_reduction <add>, %25, %cst_22 [0] : vector<4x8x128xf32> to vector<8x128xf32>
    %c0_23 = arith.constant 0 : index
    %c0_24 = arith.constant 0 : index
    %27 = vector.load %arg6[%c0_23, %c0_24] : memref<1x128xf32, #tpu.memory_space<vmem>>, vector<1x128xf32>
    %28 = vector.broadcast %27 : vector<1x128xf32> to vector<8x128xf32>
    %29 = arith.addf %26, %28 : vector<8x128xf32>
    %c0_25 = arith.constant 0 : index
    %c0_26 = arith.constant 0 : index
    %c0_27 = arith.constant 0 : index
    %30 = vector.load %arg7[%c0_25, %c0_26, %c0_27] : memref<1x8x128xf32, #tpu.memory_space<vmem>>, vector<1x8x128xf32>
    %31 = vector.shape_cast %30 : vector<1x8x128xf32> to vector<8x128xf32>
    %32 = vector.shape_cast %29 : vector<8x128xf32> to vector<1x8x128xf32>
    tpu.vector_store %arg7[%c0_25, %c0_26, %c0_27], %32 {strides = array<i32>} : memref<1x8x128xf32, #tpu.memory_space<vmem>>, vector<1x8x128xf32>,
    return
  }
  func.func @transform_0(%arg0: i32) -> (i32, i32, i32) {
    %c0_i32 = arith.constant 0 : i32
    %c0_i32_0 = arith.constant 0 : i32
    %c0_i32_1 = arith.constant 0 : i32
    return %arg0, %c0_i32, %c0_i32_0 : i32, i32, i32
  }
  func.func @transform_1(%arg0: i32) -> (i32, i32, i32) {
    %c0_i32 = arith.constant 0 : i32
    %c0_i32_0 = arith.constant 0 : i32
    %c0_i32_1 = arith.constant 0 : i32
    %c0_i32_2 = arith.constant 0 : i32
    return %c0_i32, %c0_i32_0, %c0_i32_1 : i32, i32, i32
  }
  func.func @transform_2(%arg0: i32) -> (i32, i32, i32) {
    %c0_i32 = arith.constant 0 : i32
    %c0_i32_0 = arith.constant 0 : i32
    %c0_i32_1 = arith.constant 0 : i32
    %c0_i32_2 = arith.constant 0 : i32
    return %c0_i32, %c0_i32_0, %c0_i32_1 : i32, i32, i32
  }
  func.func @transform_3(%arg0: i32) -> (i32, i32, i32) {
    %c0_i32 = arith.constant 0 : i32
    %c0_i32_0 = arith.constant 0 : i32
    %c0_i32_1 = arith.constant 0 : i32
    %c0_i32_2 = arith.constant 0 : i32
    return %c0_i32, %c0_i32_0, %c0_i32_1 : i32, i32, i32
  }
  func.func @transform_4(%arg0: i32) -> (i32, i32, i32) {
    %c0_i32 = arith.constant 0 : i32
    %c0_i32_0 = arith.constant 0 : i32
    %c0_i32_1 = arith.constant 0 : i32
    %c0_i32_2 = arith.constant 0 : i32
    return %c0_i32, %c0_i32_0, %c0_i32_1 : i32, i32, i32
  }
  func.func @transform_5(%arg0: i32) -> (i32, i32) {
    %c0_i32 = arith.constant 0 : i32
    %c0_i32_0 = arith.constant 0 : i32
    %c0_i32_1 = arith.constant 0 : i32
    return %c0_i32, %c0_i32_0 : i32, i32
  }
  func.func @transform_6(%arg0: i32) -> (i32, i32, i32) {
    %c0_i32 = arith.constant 0 : i32
    %c0_i32_0 = arith.constant 0 : i32
    %c0_i32_1 = arith.constant 0 : i32
    return %arg0, %c0_i32, %c0_i32_0 : i32, i32, i32
  }
}

</mosaic_0001>

<bundles_post_ra>
// kernel: tpu_custom_call.1
= control target key start
LH: loop header
LB: loop body
LE: loop exit
PB: predicated region body
PF: predicated region fallthrough
CT: control target
= control target key end

     0   :  { %11 = vsyncpa [#allocation3], 0  ;;  %s3078_s0 = inlined_call_operand.vmem [shape: f32[2,8,32], index: 0, kind: input, shape index: {}]   ;;  %s3079_s1 = inlined_call_operand.vmem [shape: f32[4,32,16], index: 1, kind: input, shape index: {}]   ;;  %s3080_s2 = inlined_call_operand.vmem [shape: f32[4,32,16], index: 2, kind: input, shape index: {}]   ;;  %s3081_s3 = inlined_call_operand.vmem [shape: f32[4,32,16], index: 3, kind: input, shape index: {}]   ;;  %s3082_s4 = inlined_call_operand.vmem [shape: f32[4,16,128], index: 4, kind: input, shape index: {}]   ;;  %s3083_s5 = inlined_call_operand.vmem [shape: f32[1,128], index: 5, kind: input, shape index: {}]   ;;  %s3084_s6 = inlined_call_operand.hbm [shape: f32[2,8,128], index: 6, kind: output, shape index: {}]  }
   0x1   :  { %13 = vsyncpa [#allocation3 + $0x1], 0  ;;  %s2655_s21 = smov 0   ;;  %s2657_s22 = smov 0  }
   0x2   :  { %s2659_s23 = smov 0   ;;  %s2661_s24 = smov 0  }
   0x3 LB: > { %s2676_s25 = sadd.s32 4294967295, %s2615_s24   ;;  %s2171_s26 = sadd.s32 4294967294, %s2615_s24   ;;  %s2615_s24 = sphi %s2661_s24, %s3090_s24   ;;  %s2611_s23 = sphi %s2659_s23, %s3089_s23   ;;  %s2607_s22 = sphi %s2657_s22, %s3088_s22   ;;  %s2603_s21 = sphi %s2655_s21, %s3087_s21  }
   0x4   : > { %s2680_s27 = sadd.s32 1, %s2615_s24   ;;  %s157_s28 = sadd.s32 1, %s2611_s23 }
   0x5   : > { %s154_s29 = ssub.s32 %s2615_s24, %s2680_s27  ;;  %p167_p0 = scmp.ne.s32.totalorder %s2611_s23, %s2607_s22 }
   0x6   : > { %p155_p1 = scmp.eq.s32.totalorder %s154_s29, 0  ;;  %p168_p2 = scmp.eq.s32.totalorder %s2676_s25, 1 }
   0x7   : > { %p173_p3 = scmp.ne.s32.totalorder %s2607_s22, %s2603_s21  ;;  %p174_p4 = scmp.eq.s32.totalorder %s2171_s26, 1 }
   0x8   : > { %s2691_s30 = scalar_select %p155_p1, %s2611_s23, %s157_s28  }
   0x9   : > { %p2693_p5 = por %p168_p2, %p167_p0  ;;  %p2697_p6 = por %p174_p4, %p173_p3 }
   0xa   : > { %p2174_p7 = scmp.ge.s32.totalorder %s2615_s24, 1  ;;  %p214_p8 = scmp.lt.s32.totalorder %s2615_s24, 3 }
   0xc   : > { %p215_p9 = pnand %p2174_p7, %p214_p8 }
   0xd   : > { %p243_p10 = scmp.lt.s32.totalorder (!%p215_p9), %s2676_s25, 1  ;;  %s240_s26 = sand.u32 (!%p215_p9), 1, %s2607_s22  }
   0xe   : > { %218 = sbr.rel (%p215_p9) target bundleno = 1167 (0x48f), region = 44  ;;  %s2207_s10 = sshll.u32 (!%p215_p9), %s2676_s25, 7 }
   0xf   : > { %s2110_s15 = scalar_lea.hbm (!%p215_p9), %s3084_s6, %s2207_s10  ;;  %s2099_s16 = scalar_lea.sflag (!%p215_p9), [#allocation3], %s240_s26 }
  0x10   : > { %s2619_s18 = smov (!%p215_p9), [#allocation2]  }
  0x11   : > { %s2559_s19 = sshll.u32 (!%p215_p9), %s2619_s18, 4  ;;  %s2560_s19 = int_to_ptr.vmem [resolvable:$false] %s2559_s19 }
  0x13   : > { %v251_v0 = vld [vmem:[%s3079_s1 + $0x18] sm:$0xff]  ;;  %v2617_v2 = vmov 0.0   ;;  %v250_v3 = vld [vmem:[%s3079_s1 + $0x10] sm:$0xff]  ;;  %s244_s17 = scalar_select %p243_p10, %s2676_s25, 1  ;;  %v249_v5 = vld [vmem:[%s3079_s1 + $0x8] sm:$0xff]  ;;  %vm264_vm0 = vcmask 261120  }
  0x14   : > { %v255_v1 = vld [vmem:[%s3079_s1 + $0x38] sm:$0xff]  ;;  %2298 = vmatprep.subr.mxu0 %v2617_v2  ;;  %2309 = vmatprep.subr.mxu1 %v2617_v2  ;;  %v254_v4 = vld [vmem:[%s3079_s1 + $0x30] sm:$0xff]  ;;  %v253_v6 = vld [vmem:[%s3079_s1 + $0x28] sm:$0xff]  ;;  %vm2618_vm1 = vmmov 0   ;;  %vm1144_vm2 = vcmask 130048   ;;  %vm1449_vm3 = vcmask 64512  }
  0x15   : > { %2299 = vmatpush3.msra.mxu0 %v251_v0  ;;  %2310 = vmatpush3.msra.mxu1 %v255_v1  ;;  %s2176_s28 = sshll.u32 %s244_s17, 3  ;;  %v248_v7 = vld [vmem:[%s3079_s1] sm:$0xff]  ;;  %v259_v10 = vld [vmem:[%s3079_s1 + $0x58] sm:$0xff]  ;;  %v258_v12 = vld [vmem:[%s3079_s1 + $0x50] sm:$0xff]  ;;  %s2561_s25 = scalar_lea.vmem %s2560_s19, 256 }
  0x16   : > { %2300 = vmatprep.subr.mxu0 %v2617_v2  ;;  %2311 = vmatprep.subr.mxu1 %v2617_v2  ;;  %s246_s12 = scalar_lea.vmem %s3078_s0, %s2176_s28  ;;  %v252_v8 = vld [vmem:[%s3079_s1 + $0x20] sm:$0xff]  ;;  %v263_v11 = vld [vmem:[%s3079_s1 + $0x78] sm:$0xff]  ;;  %v262_v13 = vld [vmem:[%s3079_s1 + $0x70] sm:$0xff]  ;;  %s2175_s28 = sshll.u32 %s240_s26, 3 }
  0x17   : > { %2301 = vmatpush3.msra.mxu0 %v250_v3  ;;  %2312 = vmatpush3.msra.mxu1 %v254_v4  ;;  %v2738_v9 = vld [vmem:[%s246_s12] sm:$0xff]  ;;  %v257_v14 = vld [vmem:[%s3079_s1 + $0x48] sm:$0xff]  ;;  %v551_v18 = vld [vmem:[%s3080_s2 + $0x18] sm:$0xff]  ;;  %s242_s11 = scalar_lea.vmem [#allocation2], %s2175_s28 }
  0x18   : > { %2302 = vmatprep.subr.mxu0 %v2617_v2  ;;  %2313 = vmatprep.subr.mxu1 %v2617_v2  ;;  %v261_v15 = vld [vmem:[%s3079_s1 + $0x68] sm:$0xff]  ;;  %v256_v16 = vld [vmem:[%s3079_s1 + $0x40] sm:$0xff]  ;;  %v555_v19 = vld [vmem:[%s3080_s2 + $0x38] sm:$0xff]  ;;  %s2112_s12 = sshll.u32 %s242_s11, 4  ;;  %s2113_s12 = int_to_ptr.vmem [resolvable:$true] %s2112_s12 }
  0x19   : > { %2303 = vmatpush3.msra.mxu0 %v249_v5  ;;  %2314 = vmatpush3.msra.mxu1 %v253_v6  ;;  %v260_v17 = vld [vmem:[%s3079_s1 + $0x60] sm:$0xff]  ;;  %v550_v20 = vld [vmem:[%s3080_s2 + $0x10] sm:$0xff]  ;;  %v549_v22 = vld [vmem:[%s3080_s2 + $0x8] sm:$0xff]  ;;  %s2555_s17 = scalar_lea.vmem %s2113_s12, 128  ;;  %p2562_p0 = scmp.lt.s32.totalorder %s2113_s12, %s2560_s19 }
  0x1a   : > { %2304 = vmatprep.subr.mxu0 %v2617_v2  ;;  %2315 = vmatprep.subr.mxu1 %v2617_v2  ;;  %v554_v21 = vld [vmem:[%s3080_s2 + $0x30] sm:$0xff]  ;;  %v553_v23 = vld [vmem:[%s3080_s2 + $0x28] sm:$0xff]  ;;  %v548_v24 = vld [vmem:[%s3080_s2] sm:$0xff]  ;;  %p2556_p11 = scmp.ne.s32.totalorder %s2113_s12, %s2555_s17  ;;  %p2563_p1 = scmp.lt.s32.totalorder %s2561_s25, %s2555_s17 }
  0x1b   : > { %2305 = vmatpush3.msra.mxu0 %v248_v7  ;;  %2306 = vmatprep.mubr.msk.f32.mxu0 %vm2618_vm1, %v2617_v2  ;;  %v552_v25 = vld [vmem:[%s3080_s2 + $0x20] sm:$0xff]  ;;  %v559_v26 = vld [vmem:[%s3080_s2 + $0x58] sm:$0xff]  ;;  %v558_v28 = vld [vmem:[%s3080_s2 + $0x50] sm:$0xff] }
  0x1c   : > { %2316 = vmatpush3.msra.mxu1 %v252_v8  ;;  %2307 = vmatmul.mubr.msk.f32.vlgmr.msra.gmra.mxu0 %vm264_vm0, %v2738_v9  ;;  %v563_v27 = vld [vmem:[%s3080_s2 + $0x78] sm:$0xff]  ;;  %v562_v29 = vld [vmem:[%s3080_s2 + $0x70] sm:$0xff]  ;;  %v557_v30 = vld [vmem:[%s3080_s2 + $0x48] sm:$0xff]  ;;  %p2557_p12 = pnand %p2556_p11, %p2693_p5  ;;  %p2564_p2 = por %p2563_p1, %p2562_p0 }
  0x1d   : > { %2317 = vmatprep.mubr.msk.f32.mxu1 %vm2618_vm1, %v2617_v2  ;;  %2320 = vmatprep.subr.mxu0 %v2617_v2  ;;  %v561_v31 = vld [vmem:[%s3080_s2 + $0x68] sm:$0xff]  ;;  %v556_v32 = vld [vmem:[%s3080_s2 + $0x40] sm:$0xff]  ;;  %v847_v34 = vld [vmem:[%s3081_s3 + $0x18] sm:$0xff] }
  0x1e   : > { %2331 = vmatprep.subr.mxu1 %v2617_v2  ;;  %2318 = vmatmul.mubr.msk.f32.vlgmr.msra.gmra.mxu1 %vm264_vm0, %v2738_v9  ;;  %v560_v33 = vld [vmem:[%s3080_s2 + $0x60] sm:$0xff]  ;;  %v851_v35 = vld [vmem:[%s3081_s3 + $0x38] sm:$0xff]  ;;  %v846_v36 = vld [vmem:[%s3081_s3 + $0x10] sm:$0xff]  ;;  %p2558_p13 = pneg %p2557_p12 }
  0x1f   : > { %2321 = vmatpush3.msra.mxu0 %v259_v10  ;;  %2332 = vmatpush3.msra.mxu1 %v263_v11  ;;  %v850_v37 = vld [vmem:[%s3081_s3 + $0x30] sm:$0xff]  ;;  %v845_v38 = vld [vmem:[%s3081_s3 + $0x8] sm:$0xff]  ;;  %v844_v40 = vld [vmem:[%s3081_s3] sm:$0xff] }
  0x20   : > { %2322 = vmatprep.subr.mxu0 %v2617_v2  ;;  %2333 = vmatprep.subr.mxu1 %v2617_v2  ;;  %v849_v39 = vld [vmem:[%s3081_s3 + $0x28] sm:$0xff]  ;;  %v848_v41 = vld [vmem:[%s3081_s3 + $0x20] sm:$0xff]  ;;  %v855_v42 = vld [vmem:[%s3081_s3 + $0x58] sm:$0xff]  ;;  %p2565_p3 = pnand %p2564_p2, %p2558_p13 }
  0x21   : > { %2323 = vmatpush3.msra.mxu0 %v258_v12  ;;  %2334 = vmatpush3.msra.mxu1 %v262_v13  ;;  %v859_v43 = vld [vmem:[%s3081_s3 + $0x78] sm:$0xff]  ;;  %v854_v44 = vld [vmem:[%s3081_s3 + $0x50] sm:$0xff]  ;;  %v853_v46 = vld [vmem:[%s3081_s3 + $0x48] sm:$0xff] }
  0x22   : > { %2324 = vmatprep.subr.mxu0 %v2617_v2  ;;  %2335 = vmatprep.subr.mxu1 %v2617_v2  ;;  %v858_v45 = vld [vmem:[%s3081_s3 + $0x70] sm:$0xff]  ;;  %v857_v47 = vld [vmem:[%s3081_s3 + $0x68] sm:$0xff]  ;;  %v852_v48 = vld [vmem:[%s3081_s3 + $0x40] sm:$0xff] }
  0x23   : > { %2325 = vmatpush3.msra.mxu0 %v257_v14  ;;  %2336 = vmatpush3.msra.mxu1 %v261_v15  ;;  %v856_v49 = vld [vmem:[%s3081_s3 + $0x60] sm:$0xff] }
  0x24   : > { %2326 = vmatprep.subr.mxu0 %v2617_v2  ;;  %2337 = vmatprep.subr.mxu1 %v2617_v2 }
  0x25   : > { %2327 = vmatpush3.msra.mxu0 %v256_v16  ;;  %2328 = vmatprep.mubr.msk.f32.mxu0 %vm2618_vm1, %v2617_v2 }
  0x26   : > { %2338 = vmatpush3.msra.mxu1 %v260_v17  ;;  %2329 = vmatmul.mubr.msk.f32.vlgmr.msra.gmra.mxu0 %vm264_vm0, %v2738_v9 }
  0x27   : > { %2339 = vmatprep.mubr.msk.f32.mxu1 %vm2618_vm1, %v2617_v2  ;;  %2342 = vmatprep.subr.mxu0 %v2617_v2 }
  0x28   : > { %2353 = vmatprep.subr.mxu1 %v2617_v2  ;;  %2340 = vmatmul.mubr.msk.f32.vlgmr.msra.gmra.mxu1 %vm264_vm0, %v2738_v9 }
  0x29   : > { %2343 = vmatpush3.msra.mxu0 %v551_v18  ;;  %2354 = vmatpush3.msra.mxu1 %v555_v19 }
  0x2a   : > { %2344 = vmatprep.subr.mxu0 %v2617_v2  ;;  %2355 = vmatprep.subr.mxu1 %v2617_v2 }
  0x2b   : > { %2345 = vmatpush3.msra.mxu0 %v550_v20  ;;  %2356 = vmatpush3.msra.mxu1 %v554_v21 }
  0x2c   : > { %2346 = vmatprep.subr.mxu0 %v2617_v2  ;;  %2357 = vmatprep.subr.mxu1 %v2617_v2 }
  0x2d   : > { %2347 = vmatpush3.msra.mxu0 %v549_v22  ;;  %2358 = vmatpush3.msra.mxu1 %v553_v23 }
  0x2e   : > { %2348 = vmatprep.subr.mxu0 %v2617_v2  ;;  %2359 = vmatprep.subr.mxu1 %v2617_v2 }
  0x2f   : > { %2349 = vmatpush3.msra.mxu0 %v548_v24  ;;  %2350 = vmatprep.mubr.msk.f32.mxu0 %vm2618_vm1, %v2617_v2 }
  0x30   : > { %2360 = vmatpush3.msra.mxu1 %v552_v25  ;;  %2361 = vmatprep.mubr.msk.f32.mxu1 %vm2618_vm1, %v2617_v2 }
  0x31   : > { %2351 = vmatmul.mubr.msk.f32.vlgmr.msra.gmra.mxu0 %vm264_vm0, %v2738_v9  ;;  %2362 = vmatmul.mubr.msk.f32.vlgmr.msra.gmra.mxu1 %vm264_vm0, %v2738_v9 }
  0x32   : > { %2364 = vmatprep.subr.mxu0 %v2617_v2  ;;  %2375 = vmatprep.subr.mxu1 %v2617_v2 }
  0x33   : > { %2365 = vmatpush3.msra.mxu0 %v559_v26  ;;  %2376 = vmatpush3.msra.mxu1 %v563_v27 }
  0x34   : > { %2366 = vmatprep.subr.mxu0 %v2617_v2  ;;  %2377 = vmatprep.subr.mxu1 %v2617_v2 }
  0x35   : > { %2367 = vmatpush3.msra.mxu0 %v558_v28  ;;  %2378 = vmatpush3.msra.mxu1 %v562_v29 }
  0x36   : > { %2368 = vmatprep.subr.mxu0 %v2617_v2  ;;  %2379 = vmatprep.subr.mxu1 %v2617_v2 }
  0x37   : > { %2369 = vmatpush3.msra.mxu0 %v557_v30  ;;  %2380 = vmatpush3.msra.mxu1 %v561_v31 }
  0x38   : > { %2370 = vmatprep.subr.mxu0 %v2617_v2  ;;  %2381 = vmatprep.subr.mxu1 %v2617_v2 }
  0x39   : > { %2371 = vmatpush3.msra.mxu0 %v556_v32  ;;  %2372 = vmatprep.mubr.msk.f32.mxu0 %vm2618_vm1, %v2617_v2 }
  0x3a   : > { %2382 = vmatpush3.msra.mxu1 %v560_v33  ;;  %2383 = vmatprep.mubr.msk.f32.mxu1 %vm2618_vm1, %v2617_v2 }
  0x3b   : > { %2373 = vmatmul.mubr.msk.f32.vlgmr.msra.gmra.mxu0 %vm264_vm0, %v2738_v9  ;;  %2384 = vmatmul.mubr.msk.f32.vlgmr.msra.gmra.mxu1 %vm264_vm0, %v2738_v9 }
  0x3c   : > { %2386 = vmatprep.subr.mxu0 %v2617_v2  ;;  %2397 = vmatprep.subr.mxu1 %v2617_v2 }
  0x3d   : > { %2394 = vmatprep.mubr.msk.f32.mxu0 %vm2618_vm1, %v2617_v2  ;;  %2405 = vmatprep.mubr.msk.f32.mxu1 %vm2618_vm1, %v2617_v2 }
  0x3e   : > { %2387 = vmatpush3.msra.mxu0 %v847_v34  ;;  %2398 = vmatpush3.msra.mxu1 %v851_v35 }
  0x3f   : > { %2388 = vmatprep.subr.mxu0 %v2617_v2  ;;  %2399 = vmatprep.subr.mxu1 %v2617_v2 }
  0x40   : > { %2389 = vmatpush3.msra.mxu0 %v846_v36  ;;  %2400 = vmatpush3.msra.mxu1 %v850_v37 }
  0x41   : > { %2390 = vmatprep.subr.mxu0 %v2617_v2  ;;  %2401 = vmatprep.subr.mxu1 %v2617_v2 }
  0x42   : > { %2391 = vmatpush3.msra.mxu0 %v845_v38  ;;  %2402 = vmatpush3.msra.mxu1 %v849_v39 }
  0x43   : > { %2392 = vmatprep.subr.mxu0 %v2617_v2  ;;  %2403 = vmatprep.subr.mxu1 %v2617_v2 }
  0x44   : > { %2393 = vmatpush3.msra.mxu0 %v844_v40  ;;  %2404 = vmatpush3.msra.mxu1 %v848_v41 }
  0x45   : > { %2408 = vmatprep.subr.mxu0 %v2617_v2  ;;  %2419 = vmatprep.subr.mxu1 %v2617_v2 }
  0x46   : > { %2395 = vmatmul.mubr.msk.f32.vlgmr.msra.gmra.mxu0 %vm264_vm0, %v2738_v9  ;;  %2406 = vmatmul.mubr.msk.f32.vlgmr.msra.gmra.mxu1 %vm264_vm0, %v2738_v9 }
  0x47   : > { %2416 = vmatprep.mubr.msk.f32.mxu0 %vm2618_vm1, %v2617_v2  ;;  %2427 = vmatprep.mubr.msk.f32.mxu1 %vm2618_vm1, %v2617_v2 }
  0x48   : > { %2409 = vmatpush3.msra.mxu0 %v855_v42  ;;  %2420 = vmatpush3.msra.mxu1 %v859_v43 }
  0x49   : > { %2410 = vmatprep.subr.mxu0 %v2617_v2  ;;  %2421 = vmatprep.subr.mxu1 %v2617_v2 }
  0x4a   : > { %2411 = vmatpush3.msra.mxu0 %v854_v44  ;;  %2422 = vmatpush3.msra.mxu1 %v858_v45 }
  0x4b   : > { %2412 = vmatprep.subr.mxu0 %v2617_v2  ;;  %2423 = vmatprep.subr.mxu1 %v2617_v2 }
  0x4c   : > { %2413 = vmatpush3.msra.mxu0 %v853_v46  ;;  %2424 = vmatpush3.msra.mxu1 %v857_v47 }
  0x4d   : > { %2414 = vmatprep.subr.mxu0 %v2617_v2  ;;  %2425 = vmatprep.subr.mxu1 %v2617_v2 }
  0x4e   : > { %2415 = vmatpush3.msra.mxu0 %v852_v48  ;;  %2426 = vmatpush3.msra.mxu1 %v856_v49 }
  0x4f   : > { %2417 = vmatmul.mubr.msk.f32.vlgmr.msra.gmra.mxu0 %vm264_vm0, %v2738_v9  ;;  %2428 = vmatmul.mubr.msk.f32.vlgmr.msra.gmra.mxu1 %vm264_vm0, %v2738_v9 }
  0x50   : > { %2430 = vmatprep.subr.mxu0 %v2617_v2  ;;  %2435 = vmatprep.subr.mxu1 %v2617_v2 }
  0x51   : > { %2432 = vmatprep.mubr.msk.f32.mxu0 %vm2618_vm1, %v2617_v2  ;;  %2437 = vmatprep.mubr.msk.f32.mxu1 %vm2618_vm1, %v2617_v2 }
  0xdc   : > { %v334_v50 = vpop.f32.mrf.mxu0 }
  0xdd   : > { %v1140_v60 = vmul.f32 0.25, %v334_v50 }
  0xde   : > { %v2308_v51 = vpop.f32.mrf.mxu0  ;;  %v404_v52 = vpop.f32.mrf.mxu1 }
  0xdf   : > { %v1141_v61 = vmul.f32 0.25, %v404_v52 }
  0xe0   : > { %v2319_v53 = vpop.f32.mrf.mxu1 }
  0xe6   : > { %v474_v54 = vpop.f32.mrf.mxu0 }
  0xe7   : > { %v1142_v3 = vmul.f32 0.25, %v474_v54 }
  0xe8   : > { %v2330_v55 = vpop.f32.mrf.mxu0  ;;  %v544_v56 = vpop.f32.mrf.mxu1 }
  0xe9   : > { %v1143_v4 = vmul.f32 0.25, %v544_v56 }
  0xea   : > { %v2341_v57 = vpop.f32.mrf.mxu1 }
  0xeb   : > { %v1787_v57 = vld [vmem:[%s3082_s4 + $0x8] sm:$0xff] }
  0xf1   : > { %v630_v58 = vpop.f32.mrf.mxu0  ;;  %v700_v59 = vpop.f32.mrf.mxu1 }
  0xf2   : > { %2431 = vmatpush3.xpose.msk.msra.mxu0 %vm1144_vm2, %v630_v58  ;;  %2436 = vmatpush3.xpose.msk.msra.mxu1 %vm1144_vm2, %v700_v59 }
  0xf3   : > { %v2352_v62 = vpop.f32.mrf.mxu0  ;;  %v2363_v63 = vpop.f32.mrf.mxu1  ;;  %2440 = vmatprep.subr.mxu0 %v2617_v2  ;;  %2445 = vmatprep.subr.mxu1 %v2617_v2 }
  0xf4   : > { %v1788_v62 = vld [vmem:[%s3082_s4 + $0x10] sm:$0xff]  ;;  %v1791_v63 = vld [vmem:[%s3082_s4 + $0x28] sm:$0xff] }
  0xf5   : > { %2433 = vmatmul.mubr.msk.f32.vlgmr.msra.gmra.mxu0 %vm1144_vm2, %v1140_v60  ;;  %2438 = vmatmul.mubr.msk.f32.vlgmr.msra.gmra.mxu1 %vm1144_vm2, %v1141_v61  ;;  %v1786_v60 = vld [vmem:[%s3082_s4] sm:$0xff]  ;;  %v1789_v61 = vld [vmem:[%s3082_s4 + $0x18] sm:$0xff] }
  0xf6   : > { %2442 = vmatprep.mubr.msk.f32.mxu0 %vm2618_vm1, %v2617_v2  ;;  %2447 = vmatprep.mubr.msk.f32.mxu1 %vm2618_vm1, %v2617_v2 }
  0xfb   : > { %v770_v0 = vpop.f32.mrf.mxu0  ;;  %v840_v1 = vpop.f32.mrf.mxu1 }
  0xfc   : > { %2441 = vmatpush3.xpose.msk.msra.mxu0 %vm1144_vm2, %v770_v0  ;;  %2446 = vmatpush3.xpose.msk.msra.mxu1 %vm1144_vm2, %v840_v1  ;;  %v1790_v1 = vld [vmem:[%s3082_s4 + $0x20] sm:$0xff] }
  0xfd   : > { %v2374_v5 = vpop.f32.mrf.mxu0  ;;  %v2385_v6 = vpop.f32.mrf.mxu1  ;;  %2450 = vmatprep.subr.mxu0 %v2617_v2  ;;  %2455 = vmatprep.subr.mxu1 %v2617_v2 }
  0xfe   : > { %v1792_v6 = vld [vmem:[%s3082_s4 + $0x30] sm:$0xff] }
  0xff   : > { %2443 = vmatmul.mubr.msk.f32.vlgmr.msra.gmra.mxu0 %vm1144_vm2, %v1142_v3  ;;  %2448 = vmatmul.mubr.msk.f32.vlgmr.msra.gmra.mxu1 %vm1144_vm2, %v1143_v4  ;;  %v1793_v4 = vld [vmem:[%s3082_s4 + $0x38] sm:$0xff] }
 0x100   : > { %2452 = vmatprep.mubr.msk.f32.mxu0 %vm2618_vm1, %v2617_v2  ;;  %2457 = vmatprep.mubr.msk.f32.mxu1 %vm2618_vm1, %v2617_v2 }
 0x106   : > { %v926_v7 = vpop.f32.mrf.mxu0  ;;  %v996_v8 = vpop.f32.mrf.mxu1 }
 0x107   : > { %2451 = vmatpush3.msra.mxu0 %v926_v7  ;;  %2456 = vmatpush3.msra.mxu1 %v996_v8 }
 0x108   : > { %v2396_v9 = vpop.f32.mrf.mxu0  ;;  %v2407_v10 = vpop.f32.mrf.mxu1  ;;  %2460 = vmatprep.subr.mxu0 %v2617_v2  ;;  %2465 = vmatprep.subr.mxu1 %v2617_v2 }
 0x10f   : > { %v1066_v11 = vpop.f32.mrf.mxu0  ;;  %v2978_v12 = vpop.f32.mrf.mxu1 }
 0x111   : > { %v2418_v13 = vpop.f32.mrf.mxu0  ;;  %v2429_v14 = vpop.f32.mrf.mxu1 }
 0x1b5   : > { %v1217_v15 = vpop.f32.mrf.mxu0  ;;  %v1293_v16 = vpop.f32.mrf.mxu1 }
 0x1b6   : > { %v1450_v17 = vsel %vm1449_vm3, %v1217_v15, -inf  ;;  %v1453_v20 = vsel %vm1449_vm3, %v1293_v16, -inf }
 0x1b7   : > { %v2439_v18 = vpop.f32.mrf.mxu1  ;;  %1451 = vmax.xlane.f32.xlu0 %v1450_v17  ;;  %v2434_v19 = vpop.f32.mrf.mxu0 }
 0x1bb   : > { %1454 = vmax.xlane.f32.xlu0 %v1453_v20  ;;  %v2205_v20 = vld [vmem:[%s3083_s5] ss:$0 sm:$0xff] }
 0x1bf   : > { %v1369_v21 = vpop.f32.mrf.mxu0  ;;  %v1445_v22 = vpop.f32.mrf.mxu1 }
 0x1c0   : > { %v1456_v23 = vsel %vm1449_vm3, %v1369_v21, -inf  ;;  %v1459_v26 = vsel %vm1449_vm3, %v1445_v22, -inf }
 0x1c1   : > { %v2449_v24 = vpop.f32.mrf.mxu1  ;;  %1457 = vmax.xlane.f32.xlu1 %v1456_v23  ;;  %v2444_v25 = vpop.f32.mrf.mxu0 }
 0x1c5   : > { %1460 = vmax.xlane.f32.xlu1 %v1459_v26 }
 0x240   : > { %v1452_v27 = vpop.xlane.xlu0 %1451 }
 0x241   : > { %v1462_v28 = vsub.f32 %v1217_v15, %v1452_v27 }
 0x243   : > { %v1466_v29 = vmul.f32 1.442695, %v1462_v28 }
 0x244   : > { %v1455_v30 = vpop.xlane.xlu0 %1454 }
 0x245   : > { %2539 = vpow2.f32 %v1466_v29  ;;  %v1463_v31 = vsub.f32 %v1293_v16, %v1455_v30 }
 0x247   : > { %v1468_v32 = vmul.f32 1.442695, %v1463_v31 }
 0x249   : > { %2541 = vpow2.f32 %v1468_v32 }
 0x24a   : > { %v1458_v33 = vpop.xlane.xlu1 %1457 }
 0x24b   : > { %v1464_v34 = vsub.f32 %v1369_v21, %v1458_v33 }
 0x24d   : > { %v1470_v35 = vmul.f32 1.442695, %v1464_v34 }
 0x24e   : > { %v1461_v36 = vpop.xlane.xlu1 %1460 }
 0x24f   : > { %2543 = vpow2.f32 %v1470_v35  ;;  %v1465_v37 = vsub.f32 %v1445_v22, %v1461_v36 }
 0x251   : > { %v1472_v38 = vmul.f32 1.442695, %v1465_v37 }
 0x252   : > { %v2540_v39 = vpop.eup %2539 }
 0x253   : > { %2545 = vpow2.f32 %v1472_v38  ;;  %v1474_v40 = vsel %vm1449_vm3, %v2540_v39, 0.0 }
 0x254   : > { %1475 = vadd.xlane.f32.xlu0 %v1474_v40 }
 0x256   : > { %v2542_v41 = vpop.eup %2541 }
 0x257   : > { %v1477_v42 = vsel %vm1449_vm3, %v2542_v41, 0.0 }
 0x258   : > { %1478 = vadd.xlane.f32.xlu1 %v1477_v42 }
 0x25c   : > { %v2544_v43 = vpop.eup %2543 }
 0x25d   : > { %v1480_v44 = vsel %vm1449_vm3, %v2544_v43, 0.0 }
 0x25e   : > { %1481 = vadd.xlane.f32.xlu0 %v1480_v44 }
 0x260   : > { %v2546_v45 = vpop.eup %2545 }
 0x261   : > { %v1483_v46 = vsel %vm1449_vm3, %v2546_v45, 0.0 }
 0x262   : > { %1484 = vadd.xlane.f32.xlu1 %v1483_v46 }
 0x2dd   : > { %v1476_v47 = vpop.xlane.xlu0 %1475 }
 0x2de   : > { %2547 = vrcp.f32 %v1476_v47 }
 0x2e1   : > { %v1479_v48 = vpop.xlane.xlu1 %1478 }
 0x2e2   : > { %2549 = vrcp.f32 %v1479_v48 }
 0x2e7   : > { %v1482_v49 = vpop.xlane.xlu0 %1481 }
 0x2e8   : > { %2551 = vrcp.f32 %v1482_v49 }
 0x2eb   : > { %v2548_v50 = vpop.eup %2547  ;;  %v1485_v51 = vpop.xlane.xlu1 %1484 }
 0x2ec   : > { %2553 = vrcp.f32 %v1485_v51  ;;  %v1490_v52 = vmul.f32 %v2548_v50, %v2540_v39 }
 0x2ee   : > { %2453 = vmatmul.mubr.msk.f32.vlgmr.msra.gmra.mxu0 %vm1449_vm3, %v1490_v52 }
 0x2ef   : > { %v2550_v53 = vpop.eup %2549  ;;  %2461 = vmatpush3.msra.mxu0 %v1066_v11  ;;  %2462 = vmatprep.mubr.msk.f32.mxu0 %vm2618_vm1, %v2617_v2 }
 0x2f0   : > { %v1491_v54 = vmul.f32 %v2550_v53, %v2542_v41  ;;  %2470 = vmatprep.subr.mxu0 %v2617_v2 }
 0x2f2   : > { %2458 = vmatmul.mubr.msk.f32.vlgmr.msra.gmra.mxu1 %vm1449_vm3, %v1491_v54 }
 0x2f3   : > { %2466 = vmatpush3.msra.mxu1 %v2978_v12  ;;  %2467 = vmatprep.mubr.msk.f32.mxu1 %vm2618_vm1, %v2617_v2 }
 0x2f4   : > { %2477 = vmatprep.subr.mxu1 %v2617_v2 }
 0x2f5   : > { %v2552_v55 = vpop.eup %2551 }
 0x2f6   : > { %v1492_v56 = vmul.f32 %v2552_v55, %v2544_v43 }
 0x2f8   : > { %2463 = vmatmul.mubr.msk.f32.vlgmr.msra.gmra.mxu0 %vm1449_vm3, %v1492_v56 }
 0x2f9   : > { %v2554_v58 = vpop.eup %2553  ;;  %2471 = vmatpush3.msra.mxu0 %v1787_v57  ;;  %2474 = vmatprep.mubr.msk.f32.mxu0 %vm2618_vm1, %v2617_v2 }
 0x2fa   : > { %v1493_v59 = vmul.f32 %v2554_v58, %v2546_v45  ;;  %2472 = vmatprep.subr.mxu0 %v2617_v2 }
 0x2fb   : > { %2473 = vmatpush3.msra.mxu0 %v1786_v60 }
 0x2fc   : > { %2468 = vmatmul.mubr.msk.f32.vlgmr.msra.gmra.mxu1 %vm1449_vm3, %v1493_v59  ;;  %2484 = vmatprep.subr.mxu0 %v2617_v2 }
 0x2fd   : > { %2481 = vmatprep.mubr.msk.f32.mxu1 %vm2618_vm1, %v2617_v2  ;;  %2478 = vmatpush3.msra.mxu1 %v1789_v61 }
 0x2fe   : > { %2479 = vmatprep.subr.mxu1 %v2617_v2 }
 0x2ff   : > { %2480 = vmatpush3.msra.mxu1 %v1788_v62 }
 0x300   : > { %2491 = vmatprep.subr.mxu1 %v2617_v2 }
 0x3ae   : > { %v1563_v0 = vpop.f32.mrf.mxu0 }
 0x3af   : > { %2475 = vmatmul.mubr.msk.f32.vlgmr.msra.gmra.mxu0 %vm1144_vm2, %v1563_v0 }
 0x3b0   : > { %v2454_v3 = vpop.f32.mrf.mxu0  ;;  %2485 = vmatpush3.msra.mxu0 %v1791_v63  ;;  %2488 = vmatprep.mubr.msk.f32.mxu0 %vm2618_vm1, %v2617_v2 }
 0x3b1   : > { %2486 = vmatprep.subr.mxu0 %v2617_v2 }
 0x3b2   : > { %v1636_v5 = vpop.f32.mrf.mxu1  ;;  %2487 = vmatpush3.msra.mxu0 %v1790_v1 }
 0x3b3   : > { %2482 = vmatmul.mubr.msk.f32.vlgmr.msra.gmra.mxu1 %vm1144_vm2, %v1636_v5 }
 0x3b4   : > { %v2459_v7 = vpop.f32.mrf.mxu1  ;;  %2492 = vmatpush3.msra.mxu1 %v1793_v4  ;;  %2495 = vmatprep.mubr.msk.f32.mxu1 %vm2618_vm1, %v2617_v2 }
 0x3b5   : > { %2493 = vmatprep.subr.mxu1 %v2617_v2 }
 0x3b6   : > { %2494 = vmatpush3.msra.mxu1 %v1792_v6 }
 0x3b8   : > { %v1709_v8 = vpop.f32.mrf.mxu0 }
 0x3b9   : > { %2489 = vmatmul.mubr.msk.f32.vlgmr.msra.gmra.mxu0 %vm1144_vm2, %v1709_v8 }
 0x3ba   : > { %v2464_v9 = vpop.f32.mrf.mxu0 }
 0x3bc   : > { %v1782_v10 = vpop.f32.mrf.mxu1 }
 0x3bd   : > { %2496 = vmatmul.mubr.msk.f32.vlgmr.msra.gmra.mxu1 %vm1144_vm2, %v1782_v10 }
 0x3be   : > { %v2469_v11 = vpop.f32.mrf.mxu1 }
 0x46f   : > { %v1863_v12 = vpop.f32.mrf.mxu0 }
 0x471   : > { %v2476_v13 = vpop.f32.mrf.mxu0 }
 0x473   : > { %v1936_v14 = vpop.f32.mrf.mxu1 }
 0x474   : > { %v2086_v17 = vadd.f32 %v1936_v14, %v1863_v12 }
 0x475   : > { %v2483_v15 = vpop.f32.mrf.mxu1 }
 0x479   : > { %v2009_v16 = vpop.f32.mrf.mxu0 }
 0x47a   : > { %v2087_v2 = vadd.f32 %v2086_v17, %v2009_v16 }
 0x47b   : > { %v2490_v18 = vpop.f32.mrf.mxu0 }
 0x47d   : > { %v2082_v19 = vpop.f32.mrf.mxu1 }
 0x47e   : > { %v2088_v21 = vadd.f32 %v2087_v2, %v2082_v19 }
 0x47f   : > { %v2497_v22 = vpop.f32.mrf.mxu1 }
 0x480   : > { %v2096_v23 = vadd.f32 %v2205_v20, %v2088_v21 }
 0x482   : > { %2097 = vst [vmem:[%s242_s11] sm:$0xff] %v2096_v23 }
 0x483   : > { %2568 = shalt.err (!%p2565_p3)
}
 0x484   : > { %s2569_s20 = scalar_lea.hbm %s2110_s15, 128  ;;  %s2573_s29 = scalar_lea.hbm %s3084_s6, 256 }
 0x485   : > { %p2570_p4 = scmp.ne.s32.totalorder %s2110_s15, %s2569_s20  ;;  %p2574_p9 = scmp.lt.s32.totalorder %s2110_s15, %s3084_s6 }
 0x486   : > { %p2575_p10 = scmp.lt.s32.totalorder %s2573_s29, %s2569_s20 }
 0x487   : > { %p2571_p7 = pnand %p2570_p4, %p2693_p5 }
 0x488   : > { %p2576_p11 = por %p2575_p10, %p2574_p9 }
 0x489   : > { %p2572_p8 = pneg %p2571_p7 }
 0x48b   : > { %p2577_p12 = pnand %p2576_p11, %p2572_p8 }
 0x48d   : > { %2580 = shalt.err (!%p2577_p12)
}
 0x48e   : > { %2498 = dma.vmem_to_hbm [thread:$0]  (%p2693_p5), %s2113_s12, 128, %s2110_s15, %s2099_s16  }
 0x48f PF: > { %p2504_p13 = scmp.ge.s32.totalorder %s2615_s24, 2  ;;  %s2124_s11 = sand.u32 1, %s2603_s21  }
 0x490   : > { %s2125_s13 = scalar_lea.sflag [#allocation3], %s2124_s11 }
 0x491   : > { %p2501_p0 = pnand %p2504_p13, %p2697_p6 }
 0x493   : > { %p2502_p1 = pneg %p2501_p0 }
 0x495   : > { %2598 = dma.done.wait (%p2502_p1), %s2125_s13, 128  }
 0x496   : > { %2600 = vsyncadd (%p2502_p1), %s2125_s13, 4294967168  ;;  %p16_p2 = scmp.ge.s32.totalorder %s2680_s27, 4   ;;  %s3087_s21 = smov %s2607_s22 }
 0x497   : > { %s3088_s22 = smov %s2611_s23  ;;  %s3089_s23 = smov %s2691_s30 }
 0x498   : > { %s3090_s24 = smov %s2680_s27  ;;  %18 = sbr.rel (!%p16_p2) target bundleno = 3 (0x3), region = 79 }
 0x49d   :  { %2130 = vsyncpa [#allocation3], 1 }
 0x49e   :  { %2132 = vsyncpa [#allocation3 + $0x1], 1 }

</bundles_post_ra>
